<compile_context>
chip_gen: v6e
topology: v6e:2x2x1
jax: 0.10.0
libtpu: 0.0.40
codegen_flags: <defaults>
</compile_context>

<pallas_src>
import jax
import jax.numpy as jnp
import numpy as np
from jax.experimental import pallas as pl
from jax.experimental.pallas import tpu as pltpu


def _silu(h):
    # x * sigmoid(x) == x * 0.5 * (tanh(x/2) + 1): one EUP push, no exact divide.
    return h * (0.5 * jnp.tanh(0.5 * h) + 0.5)


def score_kernel(xT_ref, tT_ref,
                 w1x_ref, w1t_ref, b1_ref,
                 w2_ref, b2_ref,
                 w3_ref, b3_ref,
                 out_ref):
    """Fused MLP vector field + Gaussian-path score, batch-on-lanes layout.

    Shapes (feature-major, batch on the lane axis):
      xT: (dim, tb)   tT: (1, tb)
      w1x: (h1, dim)  w1t: (h1, 1)  b1: (h1, 1)
      w2:  (h2, h1)   b2: (h2, 1)
      w3:  (dim, h2)  b3: (dim, 1)
      out: (dim, tb)
    """
    xT = xT_ref[...]                                  # (dim, tb) f32
    tT = tT_ref[...]                                  # (1, tb)   f32
    dim = xT.shape[0]                                 # static
    mxu_dt = w2_ref.dtype                             # MXU operand dtype (f32/bf16)

    # ---- MLPVectorField.forward(x, t) : layer 1 ----
    h = w1t_ref[...] * tT + b1_ref[...]               # (h1, tb)  t-column + bias (VPU)
    if dim <= 8:
        # K=dim contraction is lane-sparse on the MXU -> unrolled VPU FMAs instead.
        w1x = w1x_ref[...]                            # (h1, dim) f32
        for d in range(dim):                          # dim is static; fully unrolled
            h = h + w1x[:, d:d + 1] * xT[d:d + 1, :]
    else:
        h = h + jnp.dot(w1x_ref[...].astype(mxu_dt), xT.astype(mxu_dt),
                        preferred_element_type=jnp.float32)
    h = _silu(h)

    # ---- layers 2 & 3 (MXU, f32 accumulation) ----
    h = jnp.dot(w2_ref[...], h.astype(mxu_dt),
                preferred_element_type=jnp.float32) + b2_ref[...]
    h = _silu(h)
    u = jnp.dot(w3_ref[...], h.astype(mxu_dt),
                preferred_element_type=jnp.float32) + b3_ref[...]   # (dim, tb)

    # ---- score = (alpha*u - dt_alpha*x) / (beta^2*dt_alpha - alpha*dt_beta*beta)
    # With alpha=t, beta=sqrt(1-t): den == (1-t) + 0.5*t == 1 - 0.5*t  (exact).
    num = tT * u - xT                                 # (dim, tb)
    den = 1.0 - 0.5 * tT                              # (1, tb)
    inv = pl.reciprocal(den, approx=True)             # EUP slot
    inv = inv * (2.0 - den * inv)                     # one NR step -> f32-accurate
    out_ref[...] = (num * inv).astype(out_ref.dtype)


def prepare_score_params(ws, bs_, dim, *, mxu_dtype=jnp.float32):
    """One-time parameter prep (hoisted out of the hot path): split/transpose to
    feature-major layout and (optionally) cast MXU operands to bf16.

    VPU-consumed tensors (w1x for small dim, w1t, all biases) stay f32 so that
    v5e (no bf16 VPU/EUP) is unaffected."""
    w1, w2, w3 = ws
    b1, b2, b3 = bs_
    w1xT = w1[:dim, :].T                      # (h1, dim)
    w1tc = w1[dim:, :].T                      # (h1, 1)
    if dim > 8:                               # only then does w1x hit the MXU
        w1xT = w1xT.astype(mxu_dtype)
    w2T = w2.T.astype(mxu_dtype)              # (h2, h1)
    w3T = w3.T.astype(mxu_dtype)              # (dim, h2)
    return (w1xT, w1tc, b1.T, w2T, b2.T, w3T, b3.T)


def score_from_vector_field(x, t, params, *, tile_b=2048):
    """x: (bs, dim) f32, t: (bs, 1) f32, params: output of prepare_score_params."""
    bs, dim = x.shape
    w1xT, w1tc, b1c, w2T, b2c, w3T, b3c = params
    h1, h2 = w1xT.shape[0], w2T.shape[0]

    # Batch tile on the lane axis.  Small batches -> one full-array tile (exempt
    # from the 128 divisibility rule).  Large batches -> lane-dense 128-multiple
    # tiles, capped at ~bs/2 so grid >= 2 steps and both v7x TCs get work.
    if bs <= 2 * 128:
        tb, bs_pad = bs, bs
    else:
        half = -(-bs // 2)
        half = -(-half // 128) * 128
        tb = min(tile_b, half)
        bs_pad = -(-bs // tb) * tb

    xT = x.T                                   # (dim, bs)
    tT = t.T                                   # (1, bs)
    if bs_pad != bs:
        # t=0 pad -> den=1, num=0 -> finite zeros, sliced away below.
        xT = jnp.pad(xT, ((0, 0), (0, bs_pad - bs)))
        tT = jnp.pad(tT, ((0, 0), (0, bs_pad - bs)))

    batch_spec = lambda rows: pl.BlockSpec((rows, tb), lambda i: (0, i))
    resident = lambda shape: pl.BlockSpec(shape, lambda i: (0, 0))
    # TODO(synk): at production hidden sizes, stop double-buffering the
    # grid-invariant weight specs (pipeline_mode=pl.Buffered) / load them into
    # scratch once -- matters for v7x's 64 MiB VMEM, negligible at h=32.

    param_bytes = sum(int(np.prod(p.shape)) * p.dtype.itemsize for p in params)
    cost = pl.CostEstimate(
        flops=int(2 * bs_pad * (h1 * dim + h1 * h2 + h2 * dim)
                  + 12 * bs_pad * (h1 + h2 + dim)),
        transcendentals=int(bs_pad * (h1 + h2 + 1)),
        bytes_accessed=int(4 * bs_pad * (2 * dim + 1) + param_bytes),
    )

    outT = pl.pallas_call(
        score_kernel,
        out_shape=jax.ShapeDtypeStruct((dim, bs_pad), jnp.float32),
        grid=(bs_pad // tb,),
        in_specs=[batch_spec(dim), batch_spec(1),
                  resident((h1, dim)), resident((h1, 1)), resident((h1, 1)),
                  resident((h2, h1)), resident((h2, 1)),
                  resident((dim, h2)), resident((dim, 1))],
        out_specs=batch_spec(dim),
        compiler_params=pltpu.CompilerParams(
            dimension_semantics=("parallel",),      # shard batch tiles over v7x's 2 TCs
            vmem_limit_bytes=32 * 1024 * 1024),     # fits v7x's 64 MiB physical VMEM
        cost_estimate=cost,
    )(xT, tT, w1xT, w1tc, b1c, w2T, b2c, w3T, b3c)

    return outT[:, :bs].T


def make_params(key, dim, hiddens):
    """Deterministic synthetic MLP params for dims [dim+1] + hiddens + [dim]."""
    dims = [dim + 1] + list(hiddens) + [dim]
    keys = jax.random.split(key, 2 * (len(dims) - 1))
    ws, bs_ = [], []
    for i in range(len(dims) - 1):
        bound = 1.0 / np.sqrt(dims[i])
        w = jax.random.uniform(keys[2 * i], (dims[i], dims[i + 1]),
                               minval=-bound, maxval=bound, dtype=jnp.float32)
        b = jax.random.uniform(keys[2 * i + 1], (1, dims[i + 1]),
                               minval=-bound, maxval=bound, dtype=jnp.float32)
        ws.append(w)
        bs_.append(b)
    return ws, bs_


def reference(x, t, ws, bs_):
    """Pure-JAX reference of ScoreFromVectorField.forward (original formulation)."""
    xt = jnp.concatenate([x, t], axis=-1)
    h = jax.nn.silu(xt @ ws[0] + bs_[0])
    h = jax.nn.silu(h @ ws[1] + bs_[1])
    u = h @ ws[2] + bs_[2]
    alpha_t = t
    beta_t = jnp.sqrt(1.0 - t)
    dt_alpha_t = jnp.ones_like(t)
    dt_beta_t = -0.5 / jnp.sqrt(1.0 - t)
    num = alpha_t * u - dt_alpha_t * x
    den = beta_t ** 2 * dt_alpha_t - alpha_t * dt_beta_t * beta_t
    return num / den


if __name__ == "__main__":
    bs, dim, hiddens = 8, 2, [32, 32]
    key = jax.random.PRNGKey(0)
    kx, kt, kp = jax.random.split(key, 3)

    x = jax.random.normal(kx, (bs, dim), dtype=jnp.float32)
    # keep t in [0.05, 0.9] so the reference's sqrt-based denominator is well defined
    t = jax.random.uniform(kt, (bs, 1), minval=0.05, maxval=0.9, dtype=jnp.float32)

    ws, biases = make_params(kp, dim, hiddens)
    # Transposes/splits hoisted out of the per-step hot path (done once here).
    params = prepare_score_params(ws, biases, dim)     # mxu_dtype=jnp.bfloat16 at large hiddens

    out = score_from_vector_field(x, t, params)
    out = jax.block_until_ready(out)

    ref = reference(x, t, ws, biases)
    np.testing.assert_allclose(np.asarray(out), np.asarray(ref), rtol=1e-5, atol=1e-5)

    print("KERNEL_OK")
</pallas_src>

<mosaic_0001>
module attributes {stable_mosaic.version = 11 : i64} {
  func.func @score_kernel(%arg0: i32, %arg1: memref<2x8xf32, #tpu.memory_space<vmem>>, %arg2: memref<1x8xf32, #tpu.memory_space<vmem>>, %arg3: memref<32x2xf32, #tpu.memory_space<vmem>>, %arg4: memref<32x1xf32, #tpu.memory_space<vmem>>, %arg5: memref<32x1xf32, #tpu.memory_space<vmem>>, %arg6: memref<32x32xf32, #tpu.memory_space<vmem>>, %arg7: memref<32x1xf32, #tpu.memory_space<vmem>>, %arg8: memref<2x32xf32, #tpu.memory_space<vmem>>, %arg9: memref<2x1xf32, #tpu.memory_space<vmem>>, %arg10: memref<2x8xf32, #tpu.memory_space<vmem>>) attributes {dimension_semantics = [#tpu.dimension_semantics<parallel>], iteration_bounds = array<i64: 1>, scalar_prefetch = 0 : i64, scratch_operands = 0 : i64, tpu.core_type = #tpu.core_type<tc>, window_params = [{transform_indices = @transform_0, window_bounds = array<i64: 2, 8>}, {transform_indices = @transform_1, window_bounds = array<i64: 1, 8>}, {pipeline_mode = #tpu.pipeline_mode<synchronous>, transform_indices = @transform_2, window_bounds = array<i64: 32, 2>}, {pipeline_mode = #tpu.pipeline_mode<synchronous>, transform_indices = @transform_3, window_bounds = array<i64: 32, 1>}, {pipeline_mode = #tpu.pipeline_mode<synchronous>, transform_indices = @transform_4, window_bounds = array<i64: 32, 1>}, {pipeline_mode = #tpu.pipeline_mode<synchronous>, transform_indices = @transform_5, window_bounds = array<i64: 32, 32>}, {pipeline_mode = #tpu.pipeline_mode<synchronous>, transform_indices = @transform_6, window_bounds = array<i64: 32, 1>}, {pipeline_mode = #tpu.pipeline_mode<synchronous>, transform_indices = @transform_7, window_bounds = array<i64: 2, 32>}, {pipeline_mode = #tpu.pipeline_mode<synchronous>, transform_indices = @transform_8, window_bounds = array<i64: 2, 1>}, {transform_indices = @transform_9, window_bounds = array<i64: 2, 8>}]} {
    %c0 = arith.constant 0 : index
    %c0_0 = arith.constant 0 : index
    %0 = vector.load %arg1[%c0, %c0_0] : memref<2x8xf32, #tpu.memory_space<vmem>>, vector<2x8xf32>
    %c0_1 = arith.constant 0 : index
    %c0_2 = arith.constant 0 : index
    %1 = vector.load %arg2[%c0_1, %c0_2] : memref<1x8xf32, #tpu.memory_space<vmem>>, vector<1x8xf32>
    %c0_3 = arith.constant 0 : index
    %c0_4 = arith.constant 0 : index
    %2 = vector.load %arg4[%c0_3, %c0_4] : memref<32x1xf32, #tpu.memory_space<vmem>>, vector<32x1xf32>
    %3 = vector.broadcast %2 : vector<32x1xf32> to vector<32x8xf32>
    %4 = vector.broadcast %1 : vector<1x8xf32> to vector<32x8xf32>
    %5 = arith.mulf %3, %4 : vector<32x8xf32>
    %c0_5 = arith.constant 0 : index
    %c0_6 = arith.constant 0 : index
    %6 = vector.load %arg5[%c0_5, %c0_6] : memref<32x1xf32, #tpu.memory_space<vmem>>, vector<32x1xf32>
    %7 = vector.broadcast %6 : vector<32x1xf32> to vector<32x8xf32>
    %8 = arith.addf %5, %7 : vector<32x8xf32>
    %c0_7 = arith.constant 0 : index
    %c0_8 = arith.constant 0 : index
    %9 = vector.load %arg3[%c0_7, %c0_8] : memref<32x2xf32, #tpu.memory_space<vmem>>, vector<32x2xf32>
    %10 = vector.extract_strided_slice %9 {offsets = [0, 0], sizes = [32, 1], strides = [1, 1]} : vector<32x2xf32> to vector<32x1xf32>
    %11 = vector.extract_strided_slice %0 {offsets = [0, 0], sizes = [1, 8], strides = [1, 1]} : vector<2x8xf32> to vector<1x8xf32>
    %12 = vector.broadcast %10 : vector<32x1xf32> to vector<32x8xf32>
    %13 = vector.broadcast %11 : vector<1x8xf32> to vector<32x8xf32>
    %14 = arith.mulf %12, %13 : vector<32x8xf32>
    %15 = arith.addf %8, %14 : vector<32x8xf32>
    %16 = vector.extract_strided_slice %9 {offsets = [0, 1], sizes = [32, 1], strides = [1, 1]} : vector<32x2xf32> to vector<32x1xf32>
    %17 = vector.extract_strided_slice %0 {offsets = [1, 0], sizes = [1, 8], strides = [1, 1]} : vector<2x8xf32> to vector<1x8xf32>
    %18 = vector.broadcast %16 : vector<32x1xf32> to vector<32x8xf32>
    %19 = vector.broadcast %17 : vector<1x8xf32> to vector<32x8xf32>
    %20 = arith.mulf %18, %19 : vector<32x8xf32>
    %21 = arith.addf %15, %20 : vector<32x8xf32>
    %cst = arith.constant 5.000000e-01 : f32
    %22 = vector.broadcast %cst : f32 to vector<32x8xf32>
    %23 = arith.mulf %22, %21 : vector<32x8xf32>
    %24 = math.tanh %23 : vector<32x8xf32>
    %cst_9 = arith.constant 5.000000e-01 : f32
    %25 = vector.broadcast %cst_9 : f32 to vector<32x8xf32>
    %26 = arith.mulf %25, %24 : vector<32x8xf32>
    %cst_10 = arith.constant 5.000000e-01 : f32
    %27 = vector.broadcast %cst_10 : f32 to vector<32x8xf32>
    %28 = arith.addf %26, %27 : vector<32x8xf32>
    %29 = arith.mulf %21, %28 : vector<32x8xf32>
    %c0_11 = arith.constant 0 : index
    %c0_12 = arith.constant 0 : index
    %30 = vector.load %arg6[%c0_11, %c0_12] : memref<32x32xf32, #tpu.memory_space<vmem>>, vector<32x32xf32>
    %cst_13 = arith.constant dense<0.000000e+00> : vector<32x8xf32>
    %31 = tpu.matmul %30, %29, %cst_13 {dimension_numbers = #tpu.dot_dimension_numbers<[1], [0], [0], [1], [0, 0, 1, 1], [], []>} : vector<32x32xf32>, vector<32x8xf32>, vector<32x8xf32> -> vector<32x8xf32>
    %c0_14 = arith.constant 0 : index
    %c0_15 = arith.constant 0 : index
    %32 = vector.load %arg7[%c0_14, %c0_15] : memref<32x1xf32, #tpu.memory_space<vmem>>, vector<32x1xf32>
    %33 = vector.broadcast %32 : vector<32x1xf32> to vector<32x8xf32>
    %34 = arith.addf %31, %33 : vector<32x8xf32>
    %cst_16 = arith.constant 5.000000e-01 : f32
    %35 = vector.broadcast %cst_16 : f32 to vector<32x8xf32>
    %36 = arith.mulf %35, %34 : vector<32x8xf32>
    %37 = math.tanh %36 : vector<32x8xf32>
    %cst_17 = arith.constant 5.000000e-01 : f32
    %38 = vector.broadcast %cst_17 : f32 to vector<32x8xf32>
    %39 = arith.mulf %38, %37 : vector<32x8xf32>
    %cst_18 = arith.constant 5.000000e-01 : f32
    %40 = vector.broadcast %cst_18 : f32 to vector<32x8xf32>
    %41 = arith.addf %39, %40 : vector<32x8xf32>
    %42 = arith.mulf %34, %41 : vector<32x8xf32>
    %c0_19 = arith.constant 0 : index
    %c0_20 = arith.constant 0 : index
    %43 = vector.load %arg8[%c0_19, %c0_20] : memref<2x32xf32, #tpu.memory_space<vmem>>, vector<2x32xf32>
    %cst_21 = arith.constant dense<0.000000e+00> : vector<2x8xf32>
    %44 = tpu.matmul %43, %42, %cst_21 {dimension_numbers = #tpu.dot_dimension_numbers<[1], [0], [0], [1], [0, 0, 1, 1], [], []>} : vector<2x32xf32>, vector<32x8xf32>, vector<2x8xf32> -> vector<2x8xf32>
    %c0_22 = arith.constant 0 : index
    %c0_23 = arith.constant 0 : index
    %45 = vector.load %arg9[%c0_22, %c0_23] : memref<2x1xf32, #tpu.memory_space<vmem>>, vector<2x1xf32>
    %46 = vector.broadcast %45 : vector<2x1xf32> to vector<2x8xf32>
    %47 = arith.addf %44, %46 : vector<2x8xf32>
    %48 = vector.broadcast %1 : vector<1x8xf32> to vector<2x8xf32>
    %49 = arith.mulf %48, %47 : vector<2x8xf32>
    %50 = arith.subf %49, %0 : vector<2x8xf32>
    %cst_24 = arith.constant 5.000000e-01 : f32
    %51 = vector.broadcast %cst_24 : f32 to vector<1x8xf32>
    %52 = arith.mulf %51, %1 : vector<1x8xf32>
    %cst_25 = arith.constant 1.000000e+00 : f32
    %53 = vector.broadcast %cst_25 : f32 to vector<1x8xf32>
    %54 = arith.subf %53, %52 : vector<1x8xf32>
    %55 = tpu.reciprocal %54 {approx = true} : vector<1x8xf32> -> vector<1x8xf32>
    %56 = arith.mulf %54, %55 : vector<1x8xf32>
    %cst_26 = arith.constant 2.000000e+00 : f32
    %57 = vector.broadcast %cst_26 : f32 to vector<1x8xf32>
    %58 = arith.subf %57, %56 : vector<1x8xf32>
    %59 = arith.mulf %55, %58 : vector<1x8xf32>
    %60 = vector.broadcast %59 : vector<1x8xf32> to vector<2x8xf32>
    %61 = arith.mulf %50, %60 : vector<2x8xf32>
    %c0_27 = arith.constant 0 : index
    %c0_28 = arith.constant 0 : index
    %62 = vector.load %arg10[%c0_27, %c0_28] : memref<2x8xf32, #tpu.memory_space<vmem>>, vector<2x8xf32>
    tpu.vector_store %arg10[%c0_27, %c0_28], %61 {strides = array<i32>} : memref<2x8xf32, #tpu.memory_space<vmem>>, vector<2x8xf32>,
    return
  }
  func.func @transform_0(%arg0: i32) -> (i32, i32) {
    %c0_i32 = arith.constant 0 : i32
    %c0_i32_0 = arith.constant 0 : i32
    return %c0_i32, %arg0 : i32, i32
  }
  func.func @transform_1(%arg0: i32) -> (i32, i32) {
    %c0_i32 = arith.constant 0 : i32
    %c0_i32_0 = arith.constant 0 : i32
    return %c0_i32, %arg0 : i32, i32
  }
  func.func @transform_2(%arg0: i32) -> (i32, i32) {
    %c0_i32 = arith.constant 0 : i32
    %c0_i32_0 = arith.constant 0 : i32
    %c0_i32_1 = arith.constant 0 : i32
    return %c0_i32, %c0_i32_0 : i32, i32
  }
  func.func @transform_3(%arg0: i32) -> (i32, i32) {
    %c0_i32 = arith.constant 0 : i32
    %c0_i32_0 = arith.constant 0 : i32
    %c0_i32_1 = arith.constant 0 : i32
    return %c0_i32, %c0_i32_0 : i32, i32
  }
  func.func @transform_4(%arg0: i32) -> (i32, i32) {
    %c0_i32 = arith.constant 0 : i32
    %c0_i32_0 = arith.constant 0 : i32
    %c0_i32_1 = arith.constant 0 : i32
    return %c0_i32, %c0_i32_0 : i32, i32
  }
  func.func @transform_5(%arg0: i32) -> (i32, i32) {
    %c0_i32 = arith.constant 0 : i32
    %c0_i32_0 = arith.constant 0 : i32
    %c0_i32_1 = arith.constant 0 : i32
    return %c0_i32, %c0_i32_0 : i32, i32
  }
  func.func @transform_6(%arg0: i32) -> (i32, i32) {
    %c0_i32 = arith.constant 0 : i32
    %c0_i32_0 = arith.constant 0 : i32
    %c0_i32_1 = arith.constant 0 : i32
    return %c0_i32, %c0_i32_0 : i32, i32
  }
  func.func @transform_7(%arg0: i32) -> (i32, i32) {
    %c0_i32 = arith.constant 0 : i32
    %c0_i32_0 = arith.constant 0 : i32
    %c0_i32_1 = arith.constant 0 : i32
    return %c0_i32, %c0_i32_0 : i32, i32
  }
  func.func @transform_8(%arg0: i32) -> (i32, i32) {
    %c0_i32 = arith.constant 0 : i32
    %c0_i32_0 = arith.constant 0 : i32
    %c0_i32_1 = arith.constant 0 : i32
    return %c0_i32, %c0_i32_0 : i32, i32
  }
  func.func @transform_9(%arg0: i32) -> (i32, i32) {
    %c0_i32 = arith.constant 0 : i32
    %c0_i32_0 = arith.constant 0 : i32
    return %c0_i32, %arg0 : i32, i32
  }
}

</mosaic_0001>

<bundles_post_ra>
// kernel: tpu_custom_call.1
= control target key start
LH: loop header
LB: loop body
LE: loop exit
PB: predicated region body
PF: predicated region fallthrough
CT: control target
= control target key end

     0   :  { %v536_v2 = vmov 0   ;;  %s692_s0 = inlined_call_operand.vmem [shape: f32[2,8], index: 0, kind: input, shape index: {}]   ;;  %s693_s1 = inlined_call_operand.vmem [shape: f32[1,8], index: 1, kind: input, shape index: {}]   ;;  %s694_s2 = inlined_call_operand.vmem [shape: f32[32,2], index: 2, kind: input, shape index: {}]   ;;  %s695_s3 = inlined_call_operand.vmem [shape: f32[32,1], index: 3, kind: input, shape index: {}]   ;;  %s696_s4 = inlined_call_operand.vmem [shape: f32[32,1], index: 4, kind: input, shape index: {}]   ;;  %s697_s5 = inlined_call_operand.vmem [shape: f32[32,32], index: 5, kind: input, shape index: {}]   ;;  %s698_s6 = inlined_call_operand.vmem [shape: f32[32,1], index: 6, kind: input, shape index: {}]   ;;  %s699_s7 = inlined_call_operand.vmem [shape: f32[2,32], index: 7, kind: input, shape index: {}]   ;;  %s700_s8 = inlined_call_operand.vmem [shape: f32[2,1], index: 8, kind: input, shape index: {}]   ;;  %s701_s9 = inlined_call_operand.hbm [shape: f32[2,8], index: 9, kind: output, shape index: {}]  }
   0x1   :  { %v72_v0 = vld [vmem:[%s696_s4 + $0x18] sm:$0xff]  ;;  %487 = vset.pattern.permute.xlu1 %v536_v2  ;;  %486 = vset.pattern.permute.xlu0 %v536_v2  ;;  %v37_v4 = vld [vmem:[%s695_s3 + $0x10] sm:$0xff] }
   0x2   :  { %v38_v1 = vld [vmem:[%s695_s3 + $0x18] sm:$0xff]  ;;  %90 = vperm.xlu1 %487, %v72_v0  }
   0x3   :  { %56 = vperm.xlu0 %486, %v38_v1   ;;  %v100_v3 = vld [vmem:[%s694_s2 + $0x18] sm:$0xff] }
   0x4   :  { %14 = vsyncpa [#allocation3], 0  ;;  %v71_v5 = vld [vmem:[%s696_s4 + $0x10] sm:$0xff]  ;;  %v36_v6 = vld [vmem:[%s695_s3 + $0x8] sm:$0xff]  ;;  %v537_v8 = vmov 1   ;;  %vm209_vm0 = vcmask 261120   ;;  %v60_v20 = vlaneseq }
   0x5   :  { %v99_v7 = vld [vmem:[%s694_s2 + $0x10] sm:$0xff]  ;;  %v35_v9 = vld [vmem:[%s695_s3] sm:$0xff]  ;;  %v70_v10 = vld [vmem:[%s696_s4 + $0x8] sm:$0xff]  ;;  %vm539_vm1 = vmmov 0   ;;  %vm422_vm2 = vcmask 58368  }
   0x6   :  { %118 = vperm.xlu1 %487, %v100_v3   ;;  %v98_v11 = vld [vmem:[%s694_s2 + $0x8] sm:$0xff]  ;;  %v69_v12 = vld [vmem:[%s696_s4] sm:$0xff]  ;;  %v188_v15 = vld [vmem:[%s698_s6 + $0x18] sm:$0xff]  ;;  %v61_v21 = vshrl.u32 %v60_v20, 7 }
   0x7   :  { %51 = vperm.xlu0 %486, %v37_v4   ;;  %v97_v13 = vld [vmem:[%s694_s2] sm:$0xff]  ;;  %v187_v16 = vld [vmem:[%s698_s6 + $0x10] sm:$0xff]  ;;  %v186_v17 = vld [vmem:[%s698_s6 + $0x8] sm:$0xff] }
   0x8   :  { %v181_v14 = vld [vmem:[%s697_s5] sm:$0xff]  ;;  %v646_v23 = vsub.s32 0, %v61_v21  ;;  %v151_v31 = vsub.s32 1, %v61_v21 }
   0x9   :  { %464 = vmatprep.mubr.msk.f32.mxu0 %vm209_vm0, %v181_v14  ;;  %v328_v18 = vld [vmem:[%s700_s8] sm:$0x3] }
   0xa   :  { %85 = vperm.xlu1 %487, %v71_v5   ;;  %v185_v19 = vld [vmem:[%s698_s6] sm:$0xff] }
   0xb   :  { %46 = vperm.xlu0 %486, %v36_v6   ;;  %v651_v25 = vld [vmem:[%s693_s1] sm:$0x1] }
   0xc   :  { %v656_v26 = vld [vmem:[%s692_s0] sm:$0x3]  ;;  %v660_v27 = vrot.slane %v651_v25, %v646_v23 }
   0xd   :  { %v124_v30 = vrot.slane %v656_v26, %v646_v23  ;;  %v152_v36 = vrot.slane %v656_v26, %v151_v31  ;;  %v184_v31 = vld [vmem:[%s697_s5 + $0x18] sm:$0xff] }
   0xe   :  { %488 = vset.pattern.permute.xlu1 %v537_v8 }
   0xf   :  { %113 = vperm.xlu0 %486, %v99_v7   ;;  %146 = vperm.xlu1 %488, %v100_v3  }
  0x13   :  { %41 = vperm.xlu0 %486, %v35_v9   ;;  %489 = vset.pattern.permute.xlu1 %v536_v2 }
  0x14   :  { %80 = vperm.xlu1 %489, %v70_v10  }
  0x17   :  { %108 = vperm.xlu0 %486, %v98_v11  }
  0x18   :  { %490 = vset.pattern.permute.xlu1 %v537_v8 }
  0x19   :  { %142 = vperm.xlu1 %490, %v99_v7  }
  0x1b   :  { %75 = vperm.xlu0 %486, %v69_v12  }
  0x1d   :  { %491 = vset.pattern.permute.xlu1 %v536_v2 }
  0x1e   :  { %103 = vperm.xlu1 %491, %v97_v13  }
  0x1f   :  { %492 = vset.pattern.permute.xlu0 %v537_v8 }
  0x20   :  { %138 = vperm.xlu0 %492, %v98_v11  }
  0x22   :  { %493 = vset.pattern.permute.xlu1 %v537_v8 }
  0x23   :  { %134 = vperm.xlu1 %493, %v97_v13  }
  0x24   :  { %495 = vset.pattern.permute.xlu0 %v536_v2 }
  0x25   :  { %201 = vperm.xlu0 %495, %v187_v16  }
  0x27   :  { %494 = vset.pattern.permute.xlu1 %v536_v2 }
  0x28   :  { %206 = vperm.xlu1 %494, %v188_v15  }
  0x29   :  { %331 = vperm.xlu0 %495, %v328_v18  }
  0x2c   :  { %196 = vperm.xlu1 %494, %v186_v17  }
  0x30   :  { %191 = vperm.xlu1 %494, %v185_v19  }
  0x7d   :  { %v91_v22 = vpop.permute.xlu1 %90 }
  0x7e   :  { %v57_v24 = vpop.permute.xlu0 %56 }
  0x7f   :  { %v68_v32 = vmul.f32 %v660_v27, %v57_v24 }
  0x81   :  { %v119_v28 = vpop.permute.xlu1 %118  ;;  %v96_v37 = vadd.f32 %v91_v22, %v68_v32  ;;  %v538_v32 = vmov 0.0  }
  0x82   :  { %v52_v29 = vpop.permute.xlu0 %51  ;;  %v128_v35 = vmul.f32 %v124_v30, %v119_v28  ;;  %470 = vmatprep.subr.mxu1 %v538_v32  ;;  %478 = vmatprep.mubr.msk.f32.mxu1 %vm539_vm1, %v538_v32 }
  0x83   :  { %v67_v46 = vmul.f32 %v660_v27, %v52_v29  ;;  %v182_v29 = vld [vmem:[%s697_s5 + $0x8] sm:$0xff] }
  0x84   :  { %v132_v40 = vadd.f32 %v128_v35, %v96_v37 }
  0x85   :  { %v86_v33 = vpop.permute.xlu1 %85 }
  0x86   :  { %v47_v34 = vpop.permute.xlu0 %46  ;;  %v95_v49 = vadd.f32 %v86_v33, %v67_v46 }
  0x87   :  { %v66_v54 = vmul.f32 %v660_v27, %v47_v34 }
  0x8a   :  { %v114_v38 = vpop.permute.xlu0 %113  ;;  %v147_v39 = vpop.permute.xlu1 %146 }
  0x8b   :  { %v156_v41 = vmul.f32 %v152_v36, %v147_v39  ;;  %v127_v47 = vmul.f32 %v124_v30, %v114_v38 }
  0x8d   :  { %v160_v42 = vadd.f32 %v156_v41, %v132_v40  ;;  %v131_v51 = vadd.f32 %v127_v47, %v95_v49 }
  0x8e   :  { %v42_v43 = vpop.permute.xlu0 %41 }
  0x8f   :  { %v164_v44 = vmul.f32 0.5, %v160_v42  ;;  %v81_v45 = vpop.permute.xlu1 %80  ;;  %v65_v60 = vmul.f32 %v660_v27, %v42_v43 }
  0x90   :  { %v94_v57 = vadd.f32 %v81_v45, %v66_v54 }
  0x91   :  { %496 = vtanh.f32 %v164_v44 }
  0x92   :  { %v109_v48 = vpop.permute.xlu0 %108 }
  0x93   :  { %v126_v55 = vmul.f32 %v124_v30, %v109_v48 }
  0x94   :  { %v143_v50 = vpop.permute.xlu1 %142 }
  0x95   :  { %v155_v52 = vmul.f32 %v152_v36, %v143_v50  ;;  %v130_v62 = vadd.f32 %v126_v55, %v94_v57 }
  0x96   :  { %v76_v53 = vpop.permute.xlu0 %75 }
  0x97   :  { %v159_v56 = vadd.f32 %v155_v52, %v131_v51  ;;  %v93_v1 = vadd.f32 %v76_v53, %v65_v60 }
  0x99   :  { %v163_v58 = vmul.f32 0.5, %v159_v56  ;;  %v104_v59 = vpop.permute.xlu1 %103 }
  0x9a   :  { %v125_v63 = vmul.f32 %v124_v30, %v104_v59  ;;  %v183_v30 = vld [vmem:[%s697_s5 + $0x10] sm:$0xff] }
  0x9b   :  { %v139_v61 = vpop.permute.xlu0 %138  ;;  %498 = vtanh.f32 %v163_v58 }
  0x9c   :  { %v154_v0 = vmul.f32 %v152_v36, %v139_v61  ;;  %v129_v5 = vadd.f32 %v125_v63, %v93_v1  ;;  %v327_v1 = vld [vmem:[%s699_s7] sm:$0x3]  ;;  %s540_s7 = smov [#allocation2]  }
  0x9d   :  { %s430_s28 = sshll.u32 %s540_s7, 4  ;;  %s431_s28 = int_to_ptr.vmem [resolvable:$true] %s430_s28 }
  0x9e   :  { %v158_v2 = vadd.f32 %v154_v0, %v130_v62  ;;  %v497_v3 = vpop.eup %496  ;;  %v135_v4 = vpop.permute.xlu1 %134  ;;  %s514_s29 = scalar_lea.vmem %s431_s28, 32  ;;  %p519_p1 = scmp.lt.s32.totalorder %s431_s28, %s431_s28 }
  0x9f   :  { %v153_v7 = vmul.f32 %v152_v36, %v135_v4  ;;  %v172_v8 = vmul.f32 0.5, %v497_v3  ;;  %p515_p0 = scmp.ne.s32.totalorder %s431_s28, %s514_s29  ;;  %p520_p2 = scmp.lt.s32.totalorder %s514_s29, %s514_s29 }
  0xa0   :  { %v162_v6 = vmul.f32 0.5, %v158_v2  ;;  %v202_v44 = vpop.permute.xlu0 %201 }
  0xa1   :  { %v157_v9 = vadd.f32 %v153_v7, %v129_v5  ;;  %v176_v10 = vadd.f32 0.5, %v172_v8  ;;  %p521_p3 = por %p520_p2, %p519_p1 }
  0xa2   :  { %500 = vtanh.f32 %v162_v6 }
  0xa3   :  { %v161_v11 = vmul.f32 0.5, %v157_v9  ;;  %v180_v12 = vmul.f32 %v176_v10, %v160_v42  ;;  %v207_v33 = vpop.permute.xlu1 %206  ;;  %p522_p4 = pnand %p521_p3, %p515_p0 }
  0xa4   :  { %v332_v8 = vpop.permute.xlu0 %331 }
  0xa5   :  { %502 = vtanh.f32 %v161_v11  ;;  %456 = vmatprep.subr.mxu0 %v180_v12 }
  0xa6   :  { %457 = vmatpush3.msra.mxu0 %v180_v12 }
  0xa7   :  { %v197_v34 = vpop.permute.xlu1 %196 }
  0xa8   :  { %v499_v13 = vpop.eup %498 }
  0xa9   :  { %v171_v14 = vmul.f32 0.5, %v499_v13 }
  0xab   :  { %v175_v15 = vadd.f32 0.5, %v171_v14  ;;  %v192_v36 = vpop.permute.xlu1 %191 }
  0xad   :  { %v179_v16 = vmul.f32 %v175_v15, %v159_v56 }
  0xaf   :  { %v501_v17 = vpop.eup %500  ;;  %458 = vmatprep.subr.mxu0 %v179_v16 }
  0xb0   :  { %v170_v18 = vmul.f32 0.5, %v501_v17  ;;  %459 = vmatpush3.msra.mxu0 %v179_v16 }
  0xb2   :  { %v174_v19 = vadd.f32 0.5, %v170_v18  ;;  %v503_v20 = vpop.eup %502 }
  0xb3   :  { %v169_v22 = vmul.f32 0.5, %v503_v20 }
  0xb4   :  { %v178_v21 = vmul.f32 %v174_v19, %v158_v2  ;;  %v409_v2 = vmul.f32 0.5, %v651_v25 }
  0xb5   :  { %v173_v24 = vadd.f32 0.5, %v169_v22 }
  0xb6   :  { %460 = vmatprep.subr.mxu0 %v178_v21  ;;  %v410_v3 = vsub.f32 1.0, %v409_v2 }
  0xb7   :  { %461 = vmatpush3.msra.mxu0 %v178_v21  ;;  %v177_v28 = vmul.f32 %v173_v24, %v157_v9 }
  0xb9   :  { %462 = vmatprep.subr.mxu0 %v177_v28 }
  0xba   :  { %463 = vmatpush3.msra.mxu0 %v177_v28 }
  0xbb   :  { %465 = vmatmul.mubr.msk.f32.vlgmr.msra.gmra.mxu0 %vm209_vm0, %v182_v29 }
  0xbc   :  { %467 = vmatprep.mubr.msk.f32.mxu0 %vm209_vm0, %v183_v30 }
  0xbf   :  { %468 = vmatmul.mubr.msk.f32.gmra.mxu0 %vm209_vm0, %v184_v31 }
 0x17b   :  { %v466_v35 = vpop.f32.mrf.mxu0 }
 0x17c   :  { %v294_v37 = vadd.f32 %v466_v35, %v197_v34 }
 0x17d   :  { %v288_v38 = vpop.f32.mrf.mxu0 }
 0x17e   :  { %v308_v39 = vmul.f32 0.5, %v294_v37  ;;  %v289_v40 = vadd.f32 %v288_v38, %v192_v36 }
 0x17f   :  { %v469_v41 = vpop.f32.mrf.mxu0 }
 0x180   :  { %v307_v42 = vmul.f32 0.5, %v289_v40  ;;  %v304_v43 = vadd.f32 %v469_v41, %v207_v33  ;;  %504 = vtanh.f32 %v308_v39 }
 0x181   :  { %v298_v45 = vpop.f32.mrf.mxu0 }
 0x182   :  { %v310_v46 = vmul.f32 0.5, %v304_v43  ;;  %v299_v47 = vadd.f32 %v298_v45, %v202_v44  ;;  %506 = vtanh.f32 %v307_v42 }
 0x184   :  { %508 = vtanh.f32 %v310_v46  ;;  %v309_v48 = vmul.f32 0.5, %v299_v47 }
 0x186   :  { %510 = vtanh.f32 %v309_v48 }
 0x187   :  { %512 = vrcp.f32 %v410_v3 }
 0x18d   :  { %v505_v49 = vpop.eup %504 }
 0x18e   :  { %v316_v52 = vmul.f32 0.5, %v505_v49 }
 0x18f   :  { %v507_v50 = vpop.eup %506 }
 0x190   :  { %v315_v55 = vmul.f32 0.5, %v507_v50  ;;  %v320_v58 = vadd.f32 0.5, %v316_v52 }
 0x191   :  { %v509_v51 = vpop.eup %508 }
 0x192   :  { %v318_v53 = vmul.f32 0.5, %v509_v51  ;;  %v319_v61 = vadd.f32 0.5, %v315_v55  ;;  %v324_v63 = vmul.f32 %v320_v58, %v294_v37 }
 0x193   :  { %v511_v54 = vpop.eup %510 }
 0x194   :  { %v317_v56 = vmul.f32 0.5, %v511_v54  ;;  %v322_v57 = vadd.f32 0.5, %v318_v53  ;;  %v323_v0 = vmul.f32 %v319_v61, %v289_v40  ;;  %v513_v4 = vpop.eup %512 }
 0x195   :  { %v412_v5 = vmul.f32 %v513_v4, %v410_v3 }
 0x196   :  { %v321_v59 = vadd.f32 0.5, %v317_v56  ;;  %v326_v60 = vmul.f32 %v322_v57, %v304_v43 }
 0x197   :  { %v413_v6 = vsub.f32 2.0, %v412_v5 }
 0x198   :  { %v325_v62 = vmul.f32 %v321_v59, %v299_v47  ;;  %471 = vmatpush3.msra.mxu1 %v326_v60 }
 0x199   :  { %472 = vmatprep.subr.mxu1 %v538_v32  ;;  %v414_v7 = vmul.f32 %v513_v4, %v413_v6 }
 0x19a   :  { %473 = vmatpush3.msra.mxu1 %v325_v62 }
 0x19b   :  { %474 = vmatprep.subr.mxu1 %v538_v32  ;;  %v419_v13 = vrot.slane %v414_v7, %v646_v23 }
 0x19c   :  { %475 = vmatpush3.msra.mxu1 %v324_v63 }
 0x19d   :  { %476 = vmatprep.subr.mxu1 %v538_v32 }
 0x19e   :  { %477 = vmatpush3.msra.mxu1 %v323_v0 }
 0x19f   :  { %479 = vmatmul.mubr.msk.f32.vlgmr.msra.gmra.mxu1 %vm209_vm0, %v327_v1 }
 0x25f   :  { %v403_v9 = vpop.f32.mrf.mxu1 }
 0x260   :  { %v404_v10 = vadd.f32 %v403_v9, %v332_v8 }
 0x261   :  { %v480_v11 = vpop.f32.mrf.mxu1 }
 0x262   :  { %v407_v12 = vmul.f32 %v404_v10, %v660_v27 }
 0x264   :  { %v408_v14 = vsub.f32 %v407_v12, %v656_v26 }
 0x266   :  { %v421_v25 = vmul.f32 %v419_v13, %v408_v14 }
 0x268   :  { %423 = vst.msk [vmem:[#allocation2] sm:$0x3] %vm422_vm2, %v421_v25 }
 0x269   :  { %525 = shalt.err (!%p522_p4)
}
 0x26a   :  { %433 = dma.vmem_to_hbm [thread:$0]  %s431_s28, 32, %s701_s9, [#allocation3]  }
 0x26b   :  { %534 = dma.done.wait [#allocation3], 32  }
 0x26c   :  { %535 = vsyncadd [#allocation3], 4294967264 }
 0x26d   :  { %437 = vsyncpa [#allocation3], 1 }

</bundles_post_ra>
